<compile_context>
chip_gen: v6e
topology: v6e:2x2x1
jax: 0.10.0
libtpu: 0.0.40
codegen_flags: <defaults>
</compile_context>

<pallas_src>
import functools

import jax
import jax.numpy as jnp
from jax.experimental import pallas as pl
from jax.experimental.pallas import tpu as pltpu

LN_EPS = 1e-5


def _round_up(n, m):
    return ((n + m - 1) // m) * m


def _cdiv(a, b):
    return -(-a // b)


# ---------------------------------------------------------------------------
# hardware queries (best effort; safe fallbacks)
# ---------------------------------------------------------------------------
def _tpu_vmem_bytes():
    try:
        return int(pltpu.get_tpu_info().vmem_capacity_bytes)
    except Exception:
        pass
    try:
        kind = jax.devices()[0].device_kind.lower()
        if "v7" in kind:
            return 64 * 1024 * 1024
    except Exception:
        pass
    return 128 * 1024 * 1024


def _tpu_num_tensorcores():
    try:
        kind = jax.devices()[0].device_kind.lower()
        if "v7" in kind:
            return 2
    except Exception:
        pass
    return 1


# ---------------------------------------------------------------------------
# kernels
# ---------------------------------------------------------------------------
def _layer_norm_epilogue(y, gamma, beta, d_in):
    """LayerNorm over the last axis, ignoring zero-padded channels >= d_in."""
    d_pad = y.shape[-1]
    inv_d = 1.0 / d_in
    if d_pad != d_in:
        mask = (jax.lax.broadcasted_iota(jnp.int32, (1, d_pad), 1) < d_in
                ).astype(jnp.float32)
        y = y * mask
        mean = jnp.sum(y, axis=-1, keepdims=True) * inv_d
        cent = (y - mean) * mask
    else:
        mean = jnp.sum(y, axis=-1, keepdims=True) * inv_d
        cent = y - mean
    var = jnp.sum(cent * cent, axis=-1, keepdims=True) * inv_d
    inv = jax.lax.rsqrt(var + LN_EPS)
    return cent * inv * gamma + beta


def _ffn_kernel_resident(x_ref, w1_ref, b1_ref, w2_ref, ln_ref, o_ref, *, d_in):
    """n_k == 1: W1/W2 fully VMEM-resident (constant index maps), single pass."""
    x = x_ref[...]                                              # (TM, d_in_p)
    h = jnp.dot(x.astype(w1_ref.dtype), w1_ref[...],
                preferred_element_type=jnp.float32)
    h = jnp.maximum(h + b1_ref[...], 0.0)                       # ReLU, f32
    y = jnp.dot(h.astype(w2_ref.dtype), w2_ref[...],
                preferred_element_type=jnp.float32)
    ln = ln_ref[...]                                            # (3, d_in_p) f32
    # dropout: identity (eval / p=0 path); + b2 + residual
    y = y + ln[0:1, :] + x.astype(jnp.float32)
    o_ref[...] = _layer_norm_epilogue(y, ln[1:2, :], ln[2:3, :], d_in
                                      ).astype(o_ref.dtype)


def _ffn_kernel_ktiled(x_ref, w1_ref, b1_ref, w2_ref, ln_ref, o_ref, *scratch,
                       d_in):
    """n_k > 1: hidden dim is a reduction grid axis.

    If no scratch is passed (f32 output) the resident output block itself is
    used as the accumulator, saving VMEM and the final copy.
    """
    acc_ref = scratch[0] if scratch else o_ref
    k = pl.program_id(1)
    n_k = pl.num_programs(1)

    x = x_ref[...]                                              # (TM, d_in_p)
    h = jnp.dot(x.astype(w1_ref.dtype), w1_ref[...],
                preferred_element_type=jnp.float32)
    h = jnp.maximum(h + b1_ref[...], 0.0)
    contrib = jnp.dot(h.astype(w2_ref.dtype), w2_ref[...],
                      preferred_element_type=jnp.float32)

    @pl.when(k == 0)
    def _():
        acc_ref[...] = contrib.astype(acc_ref.dtype)            # write, no zero+add

    @pl.when(k > 0)
    def _():
        acc_ref[...] += contrib.astype(acc_ref.dtype)

    @pl.when(k == n_k - 1)
    def _():
        ln = ln_ref[...]
        # reuse the already-loaded x tile for the residual (no extra vld)
        y = acc_ref[...].astype(jnp.float32) + ln[0:1, :] + x.astype(jnp.float32)
        o_ref[...] = _layer_norm_epilogue(y, ln[1:2, :], ln[2:3, :], d_in
                                          ).astype(o_ref.dtype)


# ---------------------------------------------------------------------------
# wrapper / factory (one-time weight layout, per-call jitted apply)
# ---------------------------------------------------------------------------
def _pick_tile_h(d_hid_p, budget_bytes, d_in_p, w_itemsize):
    """Largest 128-multiple divisor of d_hid_p whose double-buffered W1+W2 tile
    pair fits the given budget."""
    q = d_hid_p // 128
    for t in sorted({d for d in range(1, q + 1) if q % d == 0}, reverse=True):
        th = 128 * t
        if 2 * 2 * d_in_p * th * w_itemsize <= budget_bytes:
            return th
    return 128


def make_positionwise_feed_forward(w1, b1, w2, b2, gamma, beta, *,
                                   compute_dtype=jnp.bfloat16,
                                   tile_m=None, tile_h=None):
    """Build a jitted apply(x) for the fused FFN.

    w1: (d_in, d_hid)   (torch Conv1d(d_in, d_hid, 1) weight transposed)
    w2: (d_hid, d_in)
    Weight padding / casting / stacking happens ONCE here (outside the jit).
    """
    d_in, d_hid = w1.shape
    assert w2.shape == (d_hid, d_in)

    d_in_p = _round_up(d_in, 128)
    d_hid_p = _round_up(d_hid, 128)          # lane padding only, no over-padding

    w_dtype = jnp.dtype(compute_dtype)
    w_itemsize = w_dtype.itemsize

    w1_p = jnp.pad(jnp.asarray(w1),
                   ((0, d_in_p - d_in), (0, d_hid_p - d_hid))).astype(w_dtype)
    w2_p = jnp.pad(jnp.asarray(w2),
                   ((0, d_hid_p - d_hid), (0, d_in_p - d_in))).astype(w_dtype)
    b1_p = jnp.pad(jnp.asarray(b1, jnp.float32),
                   (0, d_hid_p - d_hid)).reshape(1, d_hid_p)
    ln_params = jnp.stack([
        jnp.pad(jnp.asarray(b2, jnp.float32), (0, d_in_p - d_in)),
        jnp.pad(jnp.asarray(gamma, jnp.float32), (0, d_in_p - d_in)),
        jnp.pad(jnp.asarray(beta, jnp.float32), (0, d_in_p - d_in)),
    ], axis=0)                                                   # (3, d_in_p)

    vmem_phys = _tpu_vmem_bytes()
    n_cores = _tpu_num_tensorcores()
    big_vmem = vmem_phys >= 128 * 1024 * 1024
    # v5e/v6e (128 MiB): cap 96 MiB.  v7x (64 MiB): cap ~52 MiB.
    vmem_cap = (96 * 1024 * 1024 if big_vmem
                else min(52 * 1024 * 1024, vmem_phys - 8 * 1024 * 1024))

    weights_bytes = 2 * d_in_p * d_hid_p * w_itemsize            # W1 + W2

    # --- hidden-dim tiling ---------------------------------------------------
    if tile_h is not None:
        th = max(128, _round_up(min(tile_h, d_hid_p), 128))
        while d_hid_p % th:
            th -= 128
        th = max(th, 128)
    elif weights_bytes <= int(0.35 * vmem_cap):
        th = d_hid_p            # weight-resident: W1/W2 DMA'd exactly once
    else:
        th = _pick_tile_h(d_hid_p, vmem_cap // 2, d_in_p, w_itemsize)
    n_k = d_hid_p // th

    @jax.jit
    def _apply(x, w1_p, b1_p, w2_p, ln_params):
        B, L, _d = x.shape
        M = B * L
        x_itemsize = jnp.dtype(x.dtype).itemsize
        out_dtype = x.dtype
        out_itemsize = x_itemsize

        # --- token tiling ----------------------------------------------------
        if tile_m is not None:
            tm = tile_m
        elif n_k == 1:
            tm = 256
        else:
            # weights re-streamed once per token tile -> raise arithmetic
            # intensity on big-VMEM chips (v5e/v6e); keep 256 on v7x (64 MiB)
            tm = 512 if big_vmem else 256
        tm = max(8, _round_up(min(tm, M), 8))
        # keep both TensorCores busy on dual-core chips (v7x)
        if n_cores > 1 and _cdiv(M, tm) < n_cores:
            tm = max(8, _round_up(_cdiv(M, n_cores), 8))

        def vmem_est(tm_):
            return (2 * tm_ * d_in_p * x_itemsize        # x tile (double-buffered)
                    + 2 * tm_ * d_in_p * out_itemsize    # out tile
                    + 2 * d_in_p * th * w_itemsize       # W1 tile
                    + 2 * th * d_in_p * w_itemsize       # W2 tile
                    + tm_ * th * 4                       # hidden activations (f32)
                    + tm_ * d_in_p * 4                   # accumulator / f32 temps
                    + 4 * (th + 3 * d_in_p) * 4)         # biases / LN params

        while vmem_est(tm) > vmem_cap and tm > 8:
            tm = max(8, _round_up(tm // 2, 8))

        M_p = _round_up(M, tm)
        n_m = M_p // tm

        x2d = jnp.pad(x.reshape(M, d_in), ((0, M_p - M), (0, d_in_p - d_in)))

        vmem_limit = int(min(max(2 * vmem_est(tm), 32 * 1024 * 1024), vmem_cap))
        weight_reads = n_m if n_k > 1 else 1
        cost = pl.CostEstimate(
            flops=2 * 2 * M_p * d_in_p * d_hid_p + 10 * M_p * d_in_p,
            transcendentals=M_p,
            bytes_accessed=(M_p * d_in_p * (x_itemsize + out_itemsize)
                            + weight_reads * 2 * d_in_p * d_hid_p * w_itemsize))

        if n_k == 1:
            kernel = functools.partial(_ffn_kernel_resident, d_in=d_in)
            grid_spec = pltpu.PrefetchScalarGridSpec(
                num_scalar_prefetch=0,
                grid=(n_m,),
                in_specs=[
                    pl.BlockSpec((tm, d_in_p), lambda i: (i, 0)),        # x
                    pl.BlockSpec((d_in_p, d_hid_p), lambda i: (0, 0)),   # W1 (resident)
                    pl.BlockSpec((1, d_hid_p), lambda i: (0, 0)),        # b1
                    pl.BlockSpec((d_hid_p, d_in_p), lambda i: (0, 0)),   # W2 (resident)
                    pl.BlockSpec((3, d_in_p), lambda i: (0, 0)),         # b2/gamma/beta
                ],
                out_specs=pl.BlockSpec((tm, d_in_p), lambda i: (i, 0)),
                scratch_shapes=[],
            )
            dim_sem = ("parallel",)
        else:
            # f32 output blocks double as the accumulator (no scratch needed)
            use_scratch = jnp.dtype(out_dtype) != jnp.float32
            kernel = functools.partial(_ffn_kernel_ktiled, d_in=d_in)
            grid_spec = pltpu.PrefetchScalarGridSpec(
                num_scalar_prefetch=0,
                grid=(n_m, n_k),
                in_specs=[
                    pl.BlockSpec((tm, d_in_p), lambda i, k: (i, 0)),     # x
                    pl.BlockSpec((d_in_p, th), lambda i, k: (0, k)),     # W1 tile
                    pl.BlockSpec((1, th), lambda i, k: (0, k)),          # b1 tile
                    pl.BlockSpec((th, d_in_p), lambda i, k: (k, 0)),     # W2 tile
                    pl.BlockSpec((3, d_in_p), lambda i, k: (0, 0)),      # b2/gamma/beta
                ],
                out_specs=pl.BlockSpec((tm, d_in_p), lambda i, k: (i, 0)),
                scratch_shapes=([pltpu.VMEM((tm, d_in_p), jnp.float32)]
                                if use_scratch else []),
            )
            dim_sem = ("parallel", "arbitrary")

        out2d = pl.pallas_call(
            kernel,
            out_shape=jax.ShapeDtypeStruct((M_p, d_in_p), out_dtype),
            grid_spec=grid_spec,
            compiler_params=pltpu.CompilerParams(
                dimension_semantics=dim_sem,
                vmem_limit_bytes=vmem_limit),
            cost_estimate=cost,
        )(x2d, w1_p, b1_p, w2_p, ln_params)

        return out2d[:M, :d_in].reshape(B, L, d_in)

    def apply(x):
        return _apply(x, w1_p, b1_p, w2_p, ln_params)

    return apply


# ---------------------------------------------------------------------------
# reference + self-test
# ---------------------------------------------------------------------------
def _reference(x, w1, b1, w2, b2, gamma, beta, compute_dtype=jnp.float32):
    """Plain-JAX reference mirroring the PyTorch forward (dropout = identity),
    with matmul inputs cast to compute_dtype and f32 accumulation (matches the
    kernel's MXU path)."""
    cd = compute_dtype
    xf = x.astype(jnp.float32)
    h = jnp.einsum("bld,dh->blh", x.astype(cd), w1.astype(cd),
                   preferred_element_type=jnp.float32) + b1
    h = jnp.maximum(h, 0.0)
    y = jnp.einsum("blh,hd->bld", h.astype(cd), w2.astype(cd),
                   preferred_element_type=jnp.float32) + b2
    y = y + xf
    mean = jnp.mean(y, axis=-1, keepdims=True)
    var = jnp.mean((y - mean) ** 2, axis=-1, keepdims=True)
    return (y - mean) * jax.lax.rsqrt(var + LN_EPS) * gamma + beta


def _make_inputs(key, B, L, d_in, d_hid):
    kx, kw1, kb1, kw2, kb2, kg, kb = jax.random.split(key, 7)
    x = jax.random.normal(kx, (B, L, d_in), dtype=jnp.float32)
    # Conv1d(d_in, d_hid, 1) weight is (d_hid, d_in, 1) in torch; stored here
    # transposed as (d_in, d_hid) so the kernel does x @ W1.
    w1 = jax.random.normal(kw1, (d_in, d_hid), dtype=jnp.float32) * 0.1
    b1 = jax.random.normal(kb1, (d_hid,), dtype=jnp.float32) * 0.1
    w2 = jax.random.normal(kw2, (d_hid, d_in), dtype=jnp.float32) * 0.1
    b2 = jax.random.normal(kb2, (d_in,), dtype=jnp.float32) * 0.1
    gamma = 1.0 + 0.1 * jax.random.normal(kg, (d_in,), dtype=jnp.float32)
    beta = 0.1 * jax.random.normal(kb, (d_in,), dtype=jnp.float32)
    return x, w1, b1, w2, b2, gamma, beta


if __name__ == "__main__":
    key = jax.random.PRNGKey(0)
    k0, k1, k2, k3 = jax.random.split(key, 4)

    # TODO(synk): dropout is implemented as identity (inference / p=0 path);
    # stochastic training dropout would need pltpu.prng_* inside the kernel.

    # 1) toy shape, f32 compute path (exact check; channel padding + LN mask,
    #    weight-resident n_k == 1 path)
    x, w1, b1, w2, b2, g, bt = _make_inputs(k0, B=2, L=8, d_in=32, d_hid=64)
    ffn = make_positionwise_feed_forward(w1, b1, w2, b2, g, bt,
                                         compute_dtype=jnp.float32)
    out = jax.block_until_ready(ffn(x))
    ref = _reference(x, w1, b1, w2, b2, g, bt, compute_dtype=jnp.float32)
    assert out.shape == (2, 8, 32)
    assert jnp.allclose(out, ref, atol=2e-5, rtol=2e-5), "mismatch (toy f32)"

    # 2) default bf16 MXU path + ragged token count (M padding, many token tiles)
    x, w1, b1, w2, b2, g, bt = _make_inputs(k1, B=2, L=300, d_in=32, d_hid=64)
    ffn = make_positionwise_feed_forward(w1, b1, w2, b2, g, bt)
    out = jax.block_until_ready(ffn(x))
    ref = _reference(x, w1, b1, w2, b2, g, bt, compute_dtype=jnp.bfloat16)
    assert jnp.allclose(out, ref, atol=2e-2, rtol=2e-2), "mismatch (bf16 ragged)"

    # 3) k-tiled reduction path, f32 output accumulated directly in o_ref
    x, w1, b1, w2, b2, g, bt = _make_inputs(k2, B=2, L=64, d_in=128, d_hid=256)
    ffn = make_positionwise_feed_forward(w1, b1, w2, b2, g, bt,
                                         tile_m=64, tile_h=128)
    out = jax.block_until_ready(ffn(x))
    ref = _reference(x, w1, b1, w2, b2, g, bt, compute_dtype=jnp.bfloat16)
    assert jnp.allclose(out, ref, atol=2e-2, rtol=2e-2), "mismatch (k-tiled f32)"

    # 4) k-tiled path with bf16 activations (f32 VMEM scratch accumulator path)
    x, w1, b1, w2, b2, g, bt = _make_inputs(k3, B=2, L=64, d_in=128, d_hid=256)
    xb = x.astype(jnp.bfloat16)
    ffn = make_positionwise_feed_forward(w1, b1, w2, b2, g, bt,
                                         tile_m=64, tile_h=128)
    out = jax.block_until_ready(ffn(xb))
    ref = _reference(xb, w1, b1, w2, b2, g, bt, compute_dtype=jnp.bfloat16)
    assert jnp.allclose(out.astype(jnp.float32), ref, atol=6e-2, rtol=6e-2), \
        "mismatch (k-tiled bf16)"

    print("KERNEL_OK")
</pallas_src>

<mosaic_0001>
module attributes {stable_mosaic.version = 11 : i64} {
  func.func @_ffn_kernel_resident(%arg0: i32, %arg1: memref<16x128xf32, #tpu.memory_space<vmem>>, %arg2: memref<128x128xf32, #tpu.memory_space<vmem>>, %arg3: memref<1x128xf32, #tpu.memory_space<vmem>>, %arg4: memref<128x128xf32, #tpu.memory_space<vmem>>, %arg5: memref<3x128xf32, #tpu.memory_space<vmem>>, %arg6: memref<16x128xf32, #tpu.memory_space<vmem>>) attributes {dimension_semantics = [#tpu.dimension_semantics<parallel>], iteration_bounds = array<i64: 1>, scalar_prefetch = 0 : i64, scratch_operands = 0 : i64, tpu.core_type = #tpu.core_type<tc>, window_params = [{transform_indices = @transform_0, window_bounds = array<i64: 16, 128>}, {pipeline_mode = #tpu.pipeline_mode<synchronous>, transform_indices = @transform_1, window_bounds = array<i64: 128, 128>}, {pipeline_mode = #tpu.pipeline_mode<synchronous>, transform_indices = @transform_2, window_bounds = array<i64: 1, 128>}, {pipeline_mode = #tpu.pipeline_mode<synchronous>, transform_indices = @transform_3, window_bounds = array<i64: 128, 128>}, {pipeline_mode = #tpu.pipeline_mode<synchronous>, transform_indices = @transform_4, window_bounds = array<i64: 3, 128>}, {transform_indices = @transform_5, window_bounds = array<i64: 16, 128>}]} {
    %c0 = arith.constant 0 : index
    %c0_0 = arith.constant 0 : index
    %0 = vector.load %arg1[%c0, %c0_0] : memref<16x128xf32, #tpu.memory_space<vmem>>, vector<16x128xf32>
    %c0_1 = arith.constant 0 : index
    %c0_2 = arith.constant 0 : index
    %1 = vector.load %arg2[%c0_1, %c0_2] : memref<128x128xf32, #tpu.memory_space<vmem>>, vector<128x128xf32>
    %cst = arith.constant dense<0.000000e+00> : vector<16x128xf32>
    %2 = tpu.matmul %0, %1, %cst {dimension_numbers = #tpu.dot_dimension_numbers<[1], [0], [0], [1], [0, 0, 1, 1], [], []>} : vector<16x128xf32>, vector<128x128xf32>, vector<16x128xf32> -> vector<16x128xf32>
    %c0_3 = arith.constant 0 : index
    %c0_4 = arith.constant 0 : index
    %3 = vector.load %arg3[%c0_3, %c0_4] : memref<1x128xf32, #tpu.memory_space<vmem>>, vector<1x128xf32>
    %4 = vector.broadcast %3 : vector<1x128xf32> to vector<16x128xf32>
    %5 = arith.addf %2, %4 : vector<16x128xf32>
    %cst_5 = arith.constant 0.000000e+00 : f32
    %6 = vector.broadcast %cst_5 : f32 to vector<16x128xf32>
    %7 = arith.maximumf %5, %6 : vector<16x128xf32>
    %c0_6 = arith.constant 0 : index
    %c0_7 = arith.constant 0 : index
    %8 = vector.load %arg4[%c0_6, %c0_7] : memref<128x128xf32, #tpu.memory_space<vmem>>, vector<128x128xf32>
    %cst_8 = arith.constant dense<0.000000e+00> : vector<16x128xf32>
    %9 = tpu.matmul %7, %8, %cst_8 {dimension_numbers = #tpu.dot_dimension_numbers<[1], [0], [0], [1], [0, 0, 1, 1], [], []>} : vector<16x128xf32>, vector<128x128xf32>, vector<16x128xf32> -> vector<16x128xf32>
    %c0_9 = arith.constant 0 : index
    %c0_10 = arith.constant 0 : index
    %10 = vector.load %arg5[%c0_9, %c0_10] : memref<3x128xf32, #tpu.memory_space<vmem>>, vector<3x128xf32>
    %11 = vector.extract_strided_slice %10 {offsets = [0, 0], sizes = [1, 128], strides = [1, 1]} : vector<3x128xf32> to vector<1x128xf32>
    %12 = vector.broadcast %11 : vector<1x128xf32> to vector<16x128xf32>
    %13 = arith.addf %9, %12 : vector<16x128xf32>
    %14 = arith.addf %13, %0 : vector<16x128xf32>
    %15 = vector.extract_strided_slice %10 {offsets = [1, 0], sizes = [1, 128], strides = [1, 1]} : vector<3x128xf32> to vector<1x128xf32>
    %16 = vector.extract_strided_slice %10 {offsets = [2, 0], sizes = [1, 128], strides = [1, 1]} : vector<3x128xf32> to vector<1x128xf32>
    %17 = tpu.iota {dimensions = array<i32: 1>} : vector<1x128xi32>
    %c32_i32 = arith.constant 32 : i32
    %18 = vector.broadcast %c32_i32 : i32 to vector<1x128xi32>
    %19 = arith.cmpi slt, %17, %18 : vector<1x128xi32>
    %20 = arith.extui %19 : vector<1x128xi1> to vector<1x128xi32>
    %21 = arith.sitofp %20 : vector<1x128xi32> to vector<1x128xf32>
    %22 = vector.broadcast %21 : vector<1x128xf32> to vector<16x128xf32>
    %23 = arith.mulf %14, %22 : vector<16x128xf32>
    %cst_11 = arith.constant dense<0.000000e+00> : vector<16xf32>
    %24 = vector.multi_reduction <add>, %23, %cst_11 [1] : vector<16x128xf32> to vector<16xf32>
    %25 = vector.shape_cast %24 : vector<16xf32> to vector<16x1xf32>
    %cst_12 = arith.constant 3.125000e-02 : f32
    %26 = vector.broadcast %cst_12 : f32 to vector<16x1xf32>
    %27 = arith.mulf %25, %26 : vector<16x1xf32>
    %28 = vector.broadcast %27 : vector<16x1xf32> to vector<16x128xf32>
    %29 = arith.subf %23, %28 : vector<16x128xf32>
    %30 = vector.broadcast %21 : vector<1x128xf32> to vector<16x128xf32>
    %31 = arith.mulf %29, %30 : vector<16x128xf32>
    %32 = arith.mulf %31, %31 : vector<16x128xf32>
    %cst_13 = arith.constant dense<0.000000e+00> : vector<16xf32>
    %33 = vector.multi_reduction <add>, %32, %cst_13 [1] : vector<16x128xf32> to vector<16xf32>
    %34 = vector.shape_cast %33 : vector<16xf32> to vector<16x1xf32>
    %cst_14 = arith.constant 3.125000e-02 : f32
    %35 = vector.broadcast %cst_14 : f32 to vector<16x1xf32>
    %36 = arith.mulf %34, %35 : vector<16x1xf32>
    %cst_15 = arith.constant 9.99999974E-6 : f32
    %37 = vector.broadcast %cst_15 : f32 to vector<16x1xf32>
    %38 = arith.addf %36, %37 : vector<16x1xf32>
    %39 = math.rsqrt %38 : vector<16x1xf32>
    %40 = vector.broadcast %39 : vector<16x1xf32> to vector<16x128xf32>
    %41 = arith.mulf %31, %40 : vector<16x128xf32>
    %42 = vector.broadcast %15 : vector<1x128xf32> to vector<16x128xf32>
    %43 = arith.mulf %41, %42 : vector<16x128xf32>
    %44 = vector.broadcast %16 : vector<1x128xf32> to vector<16x128xf32>
    %45 = arith.addf %43, %44 : vector<16x128xf32>
    %c0_16 = arith.constant 0 : index
    %c0_17 = arith.constant 0 : index
    %46 = vector.load %arg6[%c0_16, %c0_17] : memref<16x128xf32, #tpu.memory_space<vmem>>, vector<16x128xf32>
    tpu.vector_store %arg6[%c0_16, %c0_17], %45 {strides = array<i32>} : memref<16x128xf32, #tpu.memory_space<vmem>>, vector<16x128xf32>,
    return
  }
  func.func @transform_0(%arg0: i32) -> (i32, i32) {
    %c0_i32 = arith.constant 0 : i32
    %c0_i32_0 = arith.constant 0 : i32
    return %arg0, %c0_i32 : i32, i32
  }
  func.func @transform_1(%arg0: i32) -> (i32, i32) {
    %c0_i32 = arith.constant 0 : i32
    %c0_i32_0 = arith.constant 0 : i32
    %c0_i32_1 = arith.constant 0 : i32
    return %c0_i32, %c0_i32_0 : i32, i32
  }
  func.func @transform_2(%arg0: i32) -> (i32, i32) {
    %c0_i32 = arith.constant 0 : i32
    %c0_i32_0 = arith.constant 0 : i32
    %c0_i32_1 = arith.constant 0 : i32
    return %c0_i32, %c0_i32_0 : i32, i32
  }
  func.func @transform_3(%arg0: i32) -> (i32, i32) {
    %c0_i32 = arith.constant 0 : i32
    %c0_i32_0 = arith.constant 0 : i32
    %c0_i32_1 = arith.constant 0 : i32
    return %c0_i32, %c0_i32_0 : i32, i32
  }
  func.func @transform_4(%arg0: i32) -> (i32, i32) {
    %c0_i32 = arith.constant 0 : i32
    %c0_i32_0 = arith.constant 0 : i32
    %c0_i32_1 = arith.constant 0 : i32
    return %c0_i32, %c0_i32_0 : i32, i32
  }
  func.func @transform_5(%arg0: i32) -> (i32, i32) {
    %c0_i32 = arith.constant 0 : i32
    %c0_i32_0 = arith.constant 0 : i32
    return %arg0, %c0_i32 : i32, i32
  }
}

</mosaic_0001>

<bundles_post_ra>
// kernel: _apply.1
= control target key start
LH: loop header
LB: loop body
LE: loop exit
PB: predicated region body
PF: predicated region fallthrough
CT: control target
= control target key end

     0   :  { %10 = vsyncpa [#allocation3], 0  ;;  %s523_s0 = inlined_call_operand.vmem [shape: f32[16,128], index: 0, kind: input, shape index: {}]   ;;  %s524_s1 = inlined_call_operand.hbm [shape: f32[128,128], index: 1, kind: input, shape index: {}]   ;;  %s525_s2 = inlined_call_operand.vmem [shape: f32[1,128], index: 2, kind: input, shape index: {}]   ;;  %s526_s3 = inlined_call_operand.hbm [shape: f32[128,128], index: 3, kind: input, shape index: {}]   ;;  %s527_s4 = inlined_call_operand.vmem [shape: f32[3,128], index: 4, kind: input, shape index: {}]   ;;  %s528_s5 = inlined_call_operand.vmem [shape: f32[16,128], index: 5, kind: output, shape index: {}]  }
   0x1   :  { %11 = vsyncpa [#allocation5], 0  ;;  %s460_s18 = smov [#allocation2]  }
   0x2   :  { %s19_s19 = sshll.u32 %s460_s18, 4  ;;  %s20_s19 = int_to_ptr.vmem [resolvable:$true] %s19_s19 }
   0x3   :  { %s424_s20 = scalar_lea.vmem %s20_s19, 2048  ;;  %p429_p1 = scmp.lt.s32.totalorder %s20_s19, %s20_s19 }
   0x4   :  { %p425_p0 = scmp.ne.s32.totalorder %s20_s19, %s424_s20  ;;  %p430_p2 = scmp.lt.s32.totalorder %s424_s20, %s424_s20 }
   0x6   :  { %p431_p3 = por %p430_p2, %p429_p1 }
   0x8   :  { %p432_p4 = pnand %p431_p3, %p425_p0 }
   0xa   :  { %435 = shalt.err (!%p432_p4)
}
   0xb   :  { %s461_s21 = smov 128   ;;  %s462_s22 = smov 8  }
   0xc   :  { %25 = dma.hbm_to_vmem [thread:$0]  %s524_s1, 2048, %s20_s19, [#allocation3], %s461_s21, %s461_s21, %s462_s22  }
   0xd   :  { %s463_s25 = smov [#allocation4]  }
   0xe   :  { %s33_s26 = sshll.u32 %s463_s25, 4  ;;  %s34_s26 = int_to_ptr.vmem [resolvable:$true] %s33_s26 }
   0xf   :  { %s444_s27 = scalar_lea.vmem %s34_s26, 2048  ;;  %p449_p6 = scmp.lt.s32.totalorder %s34_s26, %s34_s26 }
  0x10   :  { %p445_p5 = scmp.ne.s32.totalorder %s34_s26, %s444_s27  ;;  %p450_p7 = scmp.lt.s32.totalorder %s444_s27, %s444_s27 }
  0x12   :  { %p451_p8 = por %p450_p7, %p449_p6 }
  0x14   :  { %p452_p9 = pnand %p451_p8, %p445_p5 }
  0x16   :  { %455 = shalt.err (!%p452_p9)
}
  0x17   :  { %39 = dma.hbm_to_vmem [thread:$0]  %s526_s3, 2048, %s34_s26, [#allocation5], %s461_s21, %s461_s21, %s462_s22  }
  0x18   :  { %456 = dma.done.wait [#allocation3], 2048  }
  0x19   :  { %457 = vsyncadd [#allocation3], 4294965248 }
  0x1a   :  { %458 = dma.done.wait [#allocation5], 2048  }
  0x1b   :  { %459 = vsyncadd [#allocation5], 4294965248  ;;  %v65_v0 = vld [vmem:[#allocation2 + $0x78] sm:$0xff]  ;;  %v64_v1 = vld [vmem:[#allocation2 + $0x70] sm:$0xff]  ;;  %v167_v41 = vlaneseq  ;;  %v464_v52 = vmov 0.0  }
  0x1c   :  { %337 = vmatprep.subr.mxu0 %v65_v0  ;;  %v63_v2 = vld [vmem:[#allocation2 + $0x68] sm:$0xff]  ;;  %v62_v3 = vld [vmem:[#allocation2 + $0x60] sm:$0xff]  ;;  %v61_v5 = vld [vmem:[#allocation2 + $0x58] sm:$0xff] }
  0x1d   :  { %338 = vmatpush3.msra.mxu0 %v65_v0  ;;  %v504_v4 = vld [vmem:[%s523_s0] sm:$0xff]  ;;  %v165_v6 = vld [vmem:[#allocation4 + $0x78] sm:$0xff]  ;;  %v164_v7 = vld [vmem:[#allocation4 + $0x70] sm:$0xff]  ;;  %v168_v42 = vshrl.u32 %v167_v41, 7  ;;  %v249_v46 = vand.u32 127, %v167_v41 }
  0x1e   :  { %339 = vmatprep.subr.mxu0 %v64_v1  ;;  %369 = vmatprep.mubr.f32.mxu0 %v504_v4  ;;  %v60_v8 = vld [vmem:[#allocation2 + $0x50] sm:$0xff]  ;;  %v163_v9 = vld [vmem:[#allocation4 + $0x68] sm:$0xff]  ;;  %v162_v11 = vld [vmem:[#allocation4 + $0x60] sm:$0xff] }
  0x1f   :  { %340 = vmatpush3.msra.mxu0 %v64_v1  ;;  %372 = vmatprep.subr.mxu1 %v165_v6  ;;  %v59_v10 = vld [vmem:[#allocation2 + $0x48] sm:$0xff]  ;;  %v58_v12 = vld [vmem:[#allocation2 + $0x40] sm:$0xff]  ;;  %v161_v13 = vld [vmem:[#allocation4 + $0x58] sm:$0xff]  ;;  %v169_v43 = vsub.s32 0, %v168_v42  ;;  %vm250_vm0 = vcmp.lt.s32.totalorder %v249_v46, 32 }
  0x20   :  { %341 = vmatprep.subr.mxu0 %v63_v2  ;;  %373 = vmatpush3.msra.mxu1 %v165_v6  ;;  %v57_v14 = vld [vmem:[#allocation2 + $0x38] sm:$0xff]  ;;  %v160_v15 = vld [vmem:[#allocation4 + $0x50] sm:$0xff]  ;;  %v159_v17 = vld [vmem:[#allocation4 + $0x48] sm:$0xff]  ;;  %v300_v53 = vsel %vm250_vm0, 1.0, %v464_v52 }
  0x21   :  { %342 = vmatpush3.msra.mxu0 %v63_v2  ;;  %374 = vmatprep.subr.mxu1 %v164_v7  ;;  %v56_v16 = vld [vmem:[#allocation2 + $0x30] sm:$0xff]  ;;  %v55_v18 = vld [vmem:[#allocation2 + $0x28] sm:$0xff]  ;;  %v158_v19 = vld [vmem:[#allocation4 + $0x40] sm:$0xff] }
  0x22   :  { %343 = vmatprep.subr.mxu0 %v62_v3  ;;  %375 = vmatpush3.msra.mxu1 %v164_v7  ;;  %v54_v20 = vld [vmem:[#allocation2 + $0x20] sm:$0xff]  ;;  %v157_v21 = vld [vmem:[#allocation4 + $0x38] sm:$0xff]  ;;  %v156_v23 = vld [vmem:[#allocation4 + $0x30] sm:$0xff] }
  0x23   :  { %344 = vmatpush3.msra.mxu0 %v62_v3  ;;  %376 = vmatprep.subr.mxu1 %v163_v9  ;;  %v53_v22 = vld [vmem:[#allocation2 + $0x18] sm:$0xff]  ;;  %v52_v24 = vld [vmem:[#allocation2 + $0x10] sm:$0xff]  ;;  %v155_v25 = vld [vmem:[#allocation4 + $0x28] sm:$0xff] }
  0x24   :  { %345 = vmatprep.subr.mxu0 %v61_v5  ;;  %377 = vmatpush3.msra.mxu1 %v163_v9  ;;  %v51_v26 = vld [vmem:[#allocation2 + $0x8] sm:$0xff]  ;;  %v154_v27 = vld [vmem:[#allocation4 + $0x20] sm:$0xff]  ;;  %v153_v30 = vld [vmem:[#allocation4 + $0x18] sm:$0xff]  ;;  %v281_v9 = vsub.s32 1, %v168_v42 }
  0x25   :  { %346 = vmatpush3.msra.mxu0 %v61_v5  ;;  %378 = vmatprep.subr.mxu1 %v162_v11  ;;  %v50_v28 = vld [vmem:[#allocation2] sm:$0xff]  ;;  %v49_v29 = vld [vmem:[%s523_s0 + $0x8] sm:$0xff]  ;;  %v152_v31 = vld [vmem:[#allocation4 + $0x10] sm:$0xff] }
  0x26   :  { %347 = vmatprep.subr.mxu0 %v60_v8  ;;  %379 = vmatpush3.msra.mxu1 %v162_v11  ;;  %v151_v32 = vld [vmem:[#allocation4 + $0x8] sm:$0xff]  ;;  %v150_v33 = vld [vmem:[#allocation4] sm:$0xff] }
  0x27   :  { %348 = vmatpush3.msra.mxu0 %v60_v8  ;;  %380 = vmatprep.subr.mxu1 %v161_v13  ;;  %v299_v34 = vld [vmem:[%s525_s2] ss:$0 sm:$0xff] }
  0x28   :  { %349 = vmatprep.subr.mxu0 %v59_v10  ;;  %381 = vmatpush3.msra.mxu1 %v161_v13  ;;  %v166_v44 = vld [vmem:[%s527_s4] sm:$0x7] }
  0x29   :  { %350 = vmatpush3.msra.mxu0 %v59_v10  ;;  %382 = vmatprep.subr.mxu1 %v160_v15  ;;  %v170_v45 = vrot.slane %v166_v44, %v169_v43  ;;  %v287_v10 = vsub.s32 2, %v168_v42  ;;  %v282_v11 = vrot.slane %v166_v44, %v281_v9 }
  0x2a   :  { %351 = vmatprep.subr.mxu0 %v58_v12  ;;  %383 = vmatpush3.msra.mxu1 %v160_v15 }
  0x2b   :  { %352 = vmatpush3.msra.mxu0 %v58_v12  ;;  %384 = vmatprep.subr.mxu1 %v159_v17  ;;  %v288_v13 = vrot.slane %v166_v44, %v287_v10 }
  0x2c   :  { %353 = vmatprep.subr.mxu0 %v57_v14  ;;  %385 = vmatpush3.msra.mxu1 %v159_v17 }
  0x2d   :  { %354 = vmatpush3.msra.mxu0 %v57_v14  ;;  %386 = vmatprep.subr.mxu1 %v158_v19 }
  0x2e   :  { %355 = vmatprep.subr.mxu0 %v56_v16  ;;  %387 = vmatpush3.msra.mxu1 %v158_v19 }
  0x2f   :  { %356 = vmatpush3.msra.mxu0 %v56_v16  ;;  %388 = vmatprep.subr.mxu1 %v157_v21 }
  0x30   :  { %357 = vmatprep.subr.mxu0 %v55_v18  ;;  %389 = vmatpush3.msra.mxu1 %v157_v21 }
  0x31   :  { %358 = vmatpush3.msra.mxu0 %v55_v18  ;;  %390 = vmatprep.subr.mxu1 %v156_v23 }
  0x32   :  { %359 = vmatprep.subr.mxu0 %v54_v20  ;;  %391 = vmatpush3.msra.mxu1 %v156_v23 }
  0x33   :  { %360 = vmatpush3.msra.mxu0 %v54_v20  ;;  %392 = vmatprep.subr.mxu1 %v155_v25 }
  0x34   :  { %361 = vmatprep.subr.mxu0 %v53_v22  ;;  %393 = vmatpush3.msra.mxu1 %v155_v25 }
  0x35   :  { %362 = vmatpush3.msra.mxu0 %v53_v22  ;;  %394 = vmatprep.subr.mxu1 %v154_v27 }
  0x36   :  { %363 = vmatprep.subr.mxu0 %v52_v24  ;;  %395 = vmatpush3.msra.mxu1 %v154_v27 }
  0x37   :  { %364 = vmatpush3.msra.mxu0 %v52_v24  ;;  %396 = vmatprep.subr.mxu1 %v153_v30 }
  0x38   :  { %365 = vmatprep.subr.mxu0 %v51_v26  ;;  %397 = vmatpush3.msra.mxu1 %v153_v30 }
  0x39   :  { %366 = vmatpush3.msra.mxu0 %v51_v26  ;;  %398 = vmatprep.subr.mxu1 %v152_v31 }
  0x3a   :  { %367 = vmatprep.subr.mxu0 %v50_v28  ;;  %399 = vmatpush3.msra.mxu1 %v152_v31 }
  0x3b   :  { %368 = vmatpush3.msra.mxu0 %v50_v28  ;;  %400 = vmatprep.subr.mxu1 %v151_v32 }
  0x3c   :  { %370 = vmatmul.mubr.f32.vlgmr.msra.gmra.mxu0 %v49_v29  ;;  %401 = vmatpush3.msra.mxu1 %v151_v32 }
  0x3d   :  { %402 = vmatprep.subr.mxu1 %v150_v33 }
  0x3e   :  { %403 = vmatpush3.msra.mxu1 %v150_v33 }
  0xfc   :  { %v371_v35 = vpop.f32.mrf.mxu0 }
  0xfd   :  { %v145_v36 = vadd.f32 %v371_v35, %v299_v34 }
  0xfe   :  { %v139_v37 = vpop.f32.mrf.mxu0 }
  0xff   :  { %v140_v38 = vadd.f32 %v299_v34, %v139_v37  ;;  %v149_v40 = vmax.f32 %v145_v36, 0.0 }
 0x101   :  { %v148_v39 = vmax.f32 %v140_v38, 0.0 }
 0x103   :  { %404 = vmatprep.mubr.f32.mxu1 %v148_v39 }
 0x104   :  { %405 = vmatmul.mubr.f32.vlgmr.msra.gmra.mxu1 %v149_v40 }
 0x1c4   :  { %v406_v47 = vpop.f32.mrf.mxu1 }
 0x1c5   :  { %v243_v49 = vadd.f32 %v406_v47, %v170_v45 }
 0x1c6   :  { %v237_v48 = vpop.f32.mrf.mxu1 }
 0x1c7   :  { %v238_v50 = vadd.f32 %v237_v48, %v170_v45  ;;  %v247_v54 = vadd.f32 %v243_v49, %v49_v29 }
 0x1c9   :  { %v246_v51 = vadd.f32 %v238_v50, %v504_v4  ;;  %v254_v56 = vmul.f32 %v300_v53, %v247_v54 }
 0x1cb   :  { %v253_v55 = vmul.f32 %v300_v53, %v246_v51 }
 0x1cd   :  { %255 = vadd.xlane.f32.xlu0 %v253_v55 }
 0x1d1   :  { %257 = vadd.xlane.f32.xlu0 %v254_v56 }
 0x256   :  { %v256_v57 = vpop.xlane.xlu0 %255 }
 0x257   :  { %v259_v58 = vmul.f32 0.03125, %v256_v57 }
 0x259   :  { %v261_v59 = vsub.f32 %v253_v55, %v259_v58 }
 0x25a   :  { %v258_v60 = vpop.xlane.xlu0 %257 }
 0x25b   :  { %v260_v61 = vmul.f32 0.03125, %v258_v60  ;;  %v263_v62 = vmul.f32 %v300_v53, %v261_v59 }
 0x25d   :  { %v262_v63 = vsub.f32 %v254_v56, %v260_v61  ;;  %v265_v0 = vmul.f32 %v263_v62, %v263_v62 }
 0x25f   :  { %267 = vadd.xlane.f32.xlu1 %v265_v0  ;;  %v264_v1 = vmul.f32 %v300_v53, %v262_v63 }
 0x261   :  { %v266_v2 = vmul.f32 %v264_v1, %v264_v1 }
 0x263   :  { %269 = vadd.xlane.f32.xlu1 %v266_v2 }
 0x2e8   :  { %v268_v3 = vpop.xlane.xlu1 %267 }
 0x2e9   :  { %v271_v4 = vmul.f32 0.03125, %v268_v3 }
 0x2eb   :  { %v273_v5 = vadd.f32 1e-05, %v271_v4 }
 0x2ec   :  { %v270_v6 = vpop.xlane.xlu1 %269 }
 0x2ed   :  { %412 = vrsqrt.f32 %v273_v5  ;;  %v272_v7 = vmul.f32 0.03125, %v270_v6 }
 0x2ef   :  { %v274_v8 = vadd.f32 1e-05, %v272_v7 }
 0x2f1   :  { %414 = vrsqrt.f32 %v274_v8 }
 0x2fa   :  { %v413_v12 = vpop.eup %412 }
 0x2fb   :  { %v277_v14 = vmul.f32 %v413_v12, %v263_v62 }
 0x2fd   :  { %v283_v15 = vmul.f32 %v282_v11, %v277_v14 }
 0x2fe   :  { %v415_v16 = vpop.eup %414 }
 0x2ff   :  { %v289_v17 = vadd.f32 %v288_v13, %v283_v15  ;;  %v278_v18 = vmul.f32 %v415_v16, %v264_v1 }
 0x301   :  { %291 = vst [vmem:[%s528_s5] sm:$0xff] %v289_v17  ;;  %v284_v19 = vmul.f32 %v282_v11, %v278_v18 }
 0x303   :  { %v290_v20 = vadd.f32 %v288_v13, %v284_v19 }
 0x305   :  { %292 = vst [vmem:[%s528_s5 + $0x8] sm:$0xff] %v290_v20 }
 0x306   :  { %297 = vsyncpa [#allocation3], 1 }
 0x307   :  { %298 = vsyncpa [#allocation5], 1 }

</bundles_post_ra>
